<compile_context>
chip_gen: v5e
topology: v5e:2x2
jax: 0.10.0
libtpu: 0.0.40
codegen_flags: <defaults>
</compile_context>

<pallas_src>
import functools
import math

import jax
import jax.numpy as jnp
from jax.experimental import pallas as pl
from jax.experimental.pallas import tpu as pltpu


def _round_up(x, m):
    return (x + m - 1) // m * m


def _default_num_partials():
    # 2 TensorCores per chip on v7x-class parts; v5e/v6e have one.
    # TODO(synk): confirm in xprof that the leading "parallel" axis actually
    # splits across both v7x TensorCores; switch to pltpu.CORE_PARALLEL if not.
    try:
        kind = jax.devices()[0].device_kind.lower()
    except Exception:
        return 1
    return 2 if ("v7" in kind or "7x" in kind) else 1


def _span_loss_kernel(logits_ref, tgt_ref, rowc_ref, bdiag_ref, expand_ref,
                      num_out_ref, den_out_ref, num_acc, den_acc, *, acc_r):
    step = pl.program_id(1)

    @pl.when(step == 0)
    def _():
        num_acc[...] = jnp.zeros_like(num_acc)
        den_acc[...] = jnp.zeros_like(den_acc)

    x = logits_ref[...].astype(jnp.float32)                  # (TB, W), W = P*C
    rowc = rowc_ref[...]                                     # (2, W) resident consts
    lane_c = rowc[0:1, :]                                    # class id of each lane
    w_row = rowc[1:2, :]                                     # class weight of each lane

    # Broadcast per-row targets across their C-lane segment on the (idle) MXU.
    # Operands are small integers / 0-1 patterns, so this is exact even if the
    # MXU runs bf16 passes at default precision.
    tgt_b = jnp.dot(tgt_ref[...].astype(jnp.float32), expand_ref[...],
                    preferred_element_type=jnp.float32)      # (TB, W)

    # Segmented log-sum-exp: one block-diagonal MXU matmul both sums exp()
    # over each C-lane segment and broadcasts the sums back to every lane.
    m = jnp.max(x, axis=-1, keepdims=True)                   # (TB, 1) packed-row max
    xm = x - m
    e = jnp.exp(xm)
    s = jnp.dot(e, bdiag_ref[...],
                preferred_element_type=jnp.float32,
                precision=jax.lax.Precision.HIGHEST)         # (TB, W) segment sums
    # Guard against exp underflow of a whole segment (would need a >~88 logit
    # spread inside one 128-lane packed row); keeps the loss finite in that
    # pathological case instead of producing -inf.
    s = jnp.maximum(s, jnp.finfo(jnp.float32).tiny)
    log_s = jnp.log(s)                                       # = lse - m, per segment

    # One hot lane per counted row; tgt == -1 for masked / padded / garbage
    # edge rows selects nothing, so nothing non-finite can enter the sums.
    hot = lane_c == tgt_b                                    # (TB, W)
    hw = jnp.where(hot, w_row, 0.0)                          # w[y] at the hot lane
    num_c = jnp.where(hot, w_row * (log_s - xm), 0.0)        # w[y]*(lse - x_y)

    # Fold the TB axis into a small accumulator: sublane-offset VPU adds only.
    tb, w = num_c.shape
    num_acc[...] += num_c.reshape(tb // acc_r, acc_r, w).sum(axis=0)
    den_acc[...] += hw.reshape(tb // acc_r, acc_r, w).sum(axis=0)

    @pl.when(step == pl.num_programs(1) - 1)
    def _():
        num_out_ref[...] = jnp.sum(num_acc[...]).reshape(1, 1, 1)
        den_out_ref[...] = jnp.sum(den_acc[...]).reshape(1, 1, 1)


def span_loss(span_logits, span_label, span_mask, class_weight=None, *,
              block_rows=2048, num_partials=None):
    bsz, L1, L2, C = span_logits.shape
    N = bsz * L1 * L2

    # Pack P = 128 // C logical rows per 128-lane vreg row when possible.
    P = 128 // C if (C <= 128 and 128 % C == 0) else 1
    W = P * C

    # Logits stay in their original dtype (bf16 welcome); reshapes are views.
    logits = span_logits.reshape(N, C)
    if N % P:
        # Rare ragged case: pad a handful of rows so the packed view exists.
        logits = jnp.pad(logits, ((0, P - N % P), (0, 0)))
    R = logits.shape[0] // P
    logits = logits.reshape(R, W)

    # Row tile in packed rows.  256 granularity when large (so the accumulator
    # fold divides evenly); 32 keeps any dtype's sublane tiling legal.
    TB = max(32, min(_round_up(block_rows, 256), _round_up(R, 32)))
    ACC_R = math.gcd(TB, 256)
    total_steps = pl.cdiv(R, TB)

    if num_partials is None:
        num_partials = _default_num_partials()
    npart = max(1, min(num_partials, total_steps))
    S = pl.cdiv(total_steps, npart)          # reduction steps per partial
    R_cov = npart * S * TB                   # packed rows covered by the grid
    last_block = total_steps - 1

    # Fuse label+mask into one small per-row target stream: -1 means "ignore".
    # Only this tiny (N,) array is padded; the logits slab is never copied.
    tgt_dtype = jnp.int8 if C <= 127 else jnp.int32
    tgt = jnp.where(span_mask.reshape(-1) == 1,
                    span_label.reshape(-1).astype(jnp.int32), -1)
    tgt = jnp.pad(tgt, (0, R_cov * P - N), constant_values=-1)
    tgt = tgt.astype(tgt_dtype).reshape(R_cov, P)

    if class_weight is None:
        w = jnp.ones((C,), jnp.float32)
    else:
        w = jnp.asarray(class_weight, jnp.float32).reshape(C)

    # Resident constants: lane metadata, tiled class weights, and the two 0/1
    # segment matrices (fetched once, stay in VMEM; index_map -> (0, 0)).
    lane = jnp.arange(W, dtype=jnp.int32)
    seg = lane // C
    rowconst = jnp.stack([(lane % C).astype(jnp.float32), jnp.tile(w, P)], axis=0)  # (2, W)
    bdiag = (seg[:, None] == seg[None, :]).astype(jnp.float32)                      # (W, W)
    expand = (jnp.arange(P, dtype=jnp.int32)[:, None] == seg[None, :]
              ).astype(jnp.float32)                                                 # (P, W)

    kernel = functools.partial(_span_loss_kernel, acc_r=ACC_R)

    num_p, den_p = pl.pallas_call(
        kernel,
        out_shape=(jax.ShapeDtypeStruct((npart, 1, 1), jnp.float32),
                   jax.ShapeDtypeStruct((npart, 1, 1), jnp.float32)),
        grid_spec=pltpu.PrefetchScalarGridSpec(
            num_scalar_prefetch=0,
            grid=(npart, S),
            in_specs=[
                # Clamp so a fully-out-of-range overhang step just re-reads the
                # last real block; its rows are killed by the -1 targets.
                pl.BlockSpec((TB, W),
                             lambda c, i: (jnp.minimum(c * S + i, last_block), 0)),
                pl.BlockSpec((TB, P), lambda c, i: (c * S + i, 0)),
                pl.BlockSpec((2, W), lambda c, i: (0, 0)),    # lane ids + weights
                pl.BlockSpec((W, W), lambda c, i: (0, 0)),    # block-diag seg-sum
                pl.BlockSpec((P, W), lambda c, i: (0, 0)),    # target expand
            ],
            out_specs=(pl.BlockSpec((1, 1, 1), lambda c, i: (c, 0, 0)),
                       pl.BlockSpec((1, 1, 1), lambda c, i: (c, 0, 0))),
            scratch_shapes=[pltpu.VMEM((ACC_R, W), jnp.float32),
                            pltpu.VMEM((ACC_R, W), jnp.float32)],
        ),
        compiler_params=pltpu.CompilerParams(
            dimension_semantics=("parallel", "arbitrary"),
            vmem_limit_bytes=32 * 1024 * 1024),      # fits v5e/v6e/v7x budgets
    )(logits, tgt, rowconst, bdiag, expand)

    # Combine per-core partials and divide in plain JAX.
    return jnp.sum(num_p) / jnp.sum(den_p)


def span_loss_reference(span_logits, span_label, span_mask, class_weight=None):
    """Plain-JAX reference matching torch.nn.CrossEntropyLoss semantics."""
    bsz, L1, L2, C = span_logits.shape
    logits = span_logits.reshape(-1, C).astype(jnp.float32)
    labels = span_label.reshape(-1).astype(jnp.int32)
    mask = span_mask.reshape(-1).astype(jnp.float32)
    w = (jnp.ones((C,), jnp.float32) if class_weight is None
         else jnp.asarray(class_weight, jnp.float32))
    logp = jax.nn.log_softmax(logits, axis=-1)
    nll = -jnp.take_along_axis(logp, labels[:, None], axis=-1)[:, 0]
    wy = w[labels]
    return jnp.sum(nll * wy * mask) / jnp.sum(wy * mask)


if __name__ == "__main__":
    key = jax.random.PRNGKey(0)
    bsz, L, num_label = 2, 16, 8

    k1, k2 = jax.random.split(key)
    span_logits = jax.random.normal(k1, (bsz, L, L, num_label), jnp.float32)
    span_label = jax.random.randint(k2, (bsz, L, L), 0, num_label, jnp.int32)

    # Upper-triangular (j >= i) mask, as in the biaffine span setup.
    ii = jnp.arange(L)[:, None]
    jj = jnp.arange(L)[None, :]
    span_mask = jnp.broadcast_to((jj >= ii).astype(jnp.int32), (bsz, L, L))

    # Deterministic synthetic class weights (like a supplied class_weight list).
    class_weight = 1.0 + 0.1 * jnp.arange(num_label, dtype=jnp.float32)

    loss = span_loss(span_logits, span_label, span_mask, class_weight)
    loss = jax.block_until_ready(loss)

    ref = span_loss_reference(span_logits, span_label, span_mask, class_weight)
    assert jnp.allclose(loss, ref, rtol=1e-4, atol=1e-5), (loss, ref)

    print("KERNEL_OK")
</pallas_src>

<mosaic_0001>
module attributes {stable_mosaic.version = 11 : i64} {
  func.func @_span_loss_kernel(%arg0: i32, %arg1: i32, %arg2: memref<32x128xf32, #tpu.memory_space<vmem>>, %arg3: memref<32x16xi8, #tpu.memory_space<vmem>>, %arg4: memref<2x128xf32, #tpu.memory_space<vmem>>, %arg5: memref<128x128xf32, #tpu.memory_space<vmem>>, %arg6: memref<16x128xf32, #tpu.memory_space<vmem>>, %arg7: memref<1x1x1xf32, #tpu.memory_space<vmem>>, %arg8: memref<1x1x1xf32, #tpu.memory_space<vmem>>, %arg9: memref<32x128xf32, #tpu.memory_space<vmem>>, %arg10: memref<32x128xf32, #tpu.memory_space<vmem>>) attributes {dimension_semantics = [#tpu.dimension_semantics<parallel>, #tpu.dimension_semantics<arbitrary>], iteration_bounds = array<i64: 1, 1>, scalar_prefetch = 0 : i64, scratch_operands = 2 : i64, tpu.core_type = #tpu.core_type<tc>, window_params = [{transform_indices = @transform_0, window_bounds = array<i64: 32, 128>}, {transform_indices = @transform_1, window_bounds = array<i64: 32, 16>}, {pipeline_mode = #tpu.pipeline_mode<synchronous>, transform_indices = @transform_2, window_bounds = array<i64: 2, 128>}, {pipeline_mode = #tpu.pipeline_mode<synchronous>, transform_indices = @transform_3, window_bounds = array<i64: 128, 128>}, {pipeline_mode = #tpu.pipeline_mode<synchronous>, transform_indices = @transform_4, window_bounds = array<i64: 16, 128>}, {transform_indices = @transform_5, window_bounds = array<i64: 1, 1, 1>}, {transform_indices = @transform_6, window_bounds = array<i64: 1, 1, 1>}]} {
    %c0_i32 = arith.constant 0 : i32
    %0 = arith.cmpi eq, %arg1, %c0_i32 : i32
    %1 = arith.extui %0 : i1 to i32
    %c0_i32_0 = arith.constant 0 : i32
    %2 = arith.cmpi ne, %1, %c0_i32_0 : i32
    scf.if %2 {
      %cst_27 = arith.constant 0.000000e+00 : f32
      %45 = vector.broadcast %cst_27 : f32 to vector<32x128xf32>
      %c0_28 = arith.constant 0 : index
      %c0_29 = arith.constant 0 : index
      %46 = vector.load %arg9[%c0_28, %c0_29] : memref<32x128xf32, #tpu.memory_space<vmem>>, vector<32x128xf32>
      tpu.vector_store %arg9[%c0_28, %c0_29], %45 {strides = array<i32>} : memref<32x128xf32, #tpu.memory_space<vmem>>, vector<32x128xf32>,
      %cst_30 = arith.constant 0.000000e+00 : f32
      %47 = vector.broadcast %cst_30 : f32 to vector<32x128xf32>
      %c0_31 = arith.constant 0 : index
      %c0_32 = arith.constant 0 : index
      %48 = vector.load %arg10[%c0_31, %c0_32] : memref<32x128xf32, #tpu.memory_space<vmem>>, vector<32x128xf32>
      tpu.vector_store %arg10[%c0_31, %c0_32], %47 {strides = array<i32>} : memref<32x128xf32, #tpu.memory_space<vmem>>, vector<32x128xf32>,
    } else {
    }
    %c0 = arith.constant 0 : index
    %c0_1 = arith.constant 0 : index
    %3 = vector.load %arg2[%c0, %c0_1] : memref<32x128xf32, #tpu.memory_space<vmem>>, vector<32x128xf32>
    %c0_2 = arith.constant 0 : index
    %c0_3 = arith.constant 0 : index
    %4 = vector.load %arg4[%c0_2, %c0_3] : memref<2x128xf32, #tpu.memory_space<vmem>>, vector<2x128xf32>
    %5 = vector.extract_strided_slice %4 {offsets = [0, 0], sizes = [1, 128], strides = [1, 1]} : vector<2x128xf32> to vector<1x128xf32>
    %6 = vector.extract_strided_slice %4 {offsets = [1, 0], sizes = [1, 128], strides = [1, 1]} : vector<2x128xf32> to vector<1x128xf32>
    %c0_4 = arith.constant 0 : index
    %c0_5 = arith.constant 0 : index
    %7 = vector.load %arg3[%c0_4, %c0_5] : memref<32x16xi8, #tpu.memory_space<vmem>>, vector<32x16xi8>
    %8 = arith.sitofp %7 : vector<32x16xi8> to vector<32x16xf32>
    %c0_6 = arith.constant 0 : index
    %c0_7 = arith.constant 0 : index
    %9 = vector.load %arg6[%c0_6, %c0_7] : memref<16x128xf32, #tpu.memory_space<vmem>>, vector<16x128xf32>
    %cst = arith.constant dense<0.000000e+00> : vector<32x128xf32>
    %10 = tpu.matmul %8, %9, %cst {dimension_numbers = #tpu.dot_dimension_numbers<[1], [0], [0], [1], [0, 0, 1, 1], [], []>} : vector<32x16xf32>, vector<16x128xf32>, vector<32x128xf32> -> vector<32x128xf32>
    %cst_8 = arith.constant dense<0xFF800000> : vector<32xf32>
    %11 = vector.multi_reduction <maximumf>, %3, %cst_8 [1] : vector<32x128xf32> to vector<32xf32>
    %12 = vector.shape_cast %11 : vector<32xf32> to vector<32x1xf32>
    %13 = vector.broadcast %12 : vector<32x1xf32> to vector<32x128xf32>
    %14 = arith.subf %3, %13 : vector<32x128xf32>
    %15 = math.exp %14 : vector<32x128xf32>
    %c0_9 = arith.constant 0 : index
    %c0_10 = arith.constant 0 : index
    %16 = vector.load %arg5[%c0_9, %c0_10] : memref<128x128xf32, #tpu.memory_space<vmem>>, vector<128x128xf32>
    %cst_11 = arith.constant dense<0.000000e+00> : vector<32x128xf32>
    %17 = tpu.matmul %15, %16, %cst_11 {dimension_numbers = #tpu.dot_dimension_numbers<[1], [0], [0], [1], [0, 0, 1, 1], [], []>, precision = #tpu.contract_precision<fp32>} : vector<32x128xf32>, vector<128x128xf32>, vector<32x128xf32> -> vector<32x128xf32>
    %cst_12 = arith.constant 1.17549435E-38 : f32
    %18 = vector.broadcast %cst_12 : f32 to vector<32x128xf32>
    %19 = arith.maximumf %17, %18 : vector<32x128xf32>
    %20 = math.log %19 : vector<32x128xf32>
    %21 = vector.broadcast %5 : vector<1x128xf32> to vector<32x128xf32>
    %22 = arith.cmpf oeq, %21, %10 : vector<32x128xf32>
    %cst_13 = arith.constant 0.000000e+00 : f32
    %23 = vector.shape_cast %6 : vector<1x128xf32> to vector<1x128xf32>
    %24 = vector.broadcast %23 : vector<1x128xf32> to vector<32x128xf32>
    %25 = vector.broadcast %cst_13 : f32 to vector<32x128xf32>
    %26 = arith.select %22, %24, %25 : vector<32x128xi1>, vector<32x128xf32>
    %27 = arith.subf %20, %14 : vector<32x128xf32>
    %28 = vector.broadcast %6 : vector<1x128xf32> to vector<32x128xf32>
    %29 = arith.mulf %28, %27 : vector<32x128xf32>
    %cst_14 = arith.constant 0.000000e+00 : f32
    %30 = vector.broadcast %cst_14 : f32 to vector<32x128xf32>
    %31 = arith.select %22, %29, %30 : vector<32x128xi1>, vector<32x128xf32>
    %c0_15 = arith.constant 0 : index
    %c0_16 = arith.constant 0 : index
    %32 = vector.load %arg9[%c0_15, %c0_16] : memref<32x128xf32, #tpu.memory_space<vmem>>, vector<32x128xf32>
    %33 = vector.shape_cast %31 : vector<32x128xf32> to vector<1x32x128xf32>
    %cst_17 = arith.constant dense<0.000000e+00> : vector<32x128xf32>
    %34 = vector.multi_reduction <add>, %33, %cst_17 [0] : vector<1x32x128xf32> to vector<32x128xf32>
    %35 = arith.addf %32, %34 : vector<32x128xf32>
    %c0_18 = arith.constant 0 : index
    %c0_19 = arith.constant 0 : index
    %36 = vector.load %arg9[%c0_18, %c0_19] : memref<32x128xf32, #tpu.memory_space<vmem>>, vector<32x128xf32>
    tpu.vector_store %arg9[%c0_18, %c0_19], %35 {strides = array<i32>} : memref<32x128xf32, #tpu.memory_space<vmem>>, vector<32x128xf32>,
    %c0_20 = arith.constant 0 : index
    %c0_21 = arith.constant 0 : index
    %37 = vector.load %arg10[%c0_20, %c0_21] : memref<32x128xf32, #tpu.memory_space<vmem>>, vector<32x128xf32>
    %38 = vector.shape_cast %26 : vector<32x128xf32> to vector<1x32x128xf32>
    %cst_22 = arith.constant dense<0.000000e+00> : vector<32x128xf32>
    %39 = vector.multi_reduction <add>, %38, %cst_22 [0] : vector<1x32x128xf32> to vector<32x128xf32>
    %40 = arith.addf %37, %39 : vector<32x128xf32>
    %c0_23 = arith.constant 0 : index
    %c0_24 = arith.constant 0 : index
    %41 = vector.load %arg10[%c0_23, %c0_24] : memref<32x128xf32, #tpu.memory_space<vmem>>, vector<32x128xf32>
    tpu.vector_store %arg10[%c0_23, %c0_24], %40 {strides = array<i32>} : memref<32x128xf32, #tpu.memory_space<vmem>>, vector<32x128xf32>,
    %c0_i32_25 = arith.constant 0 : i32
    %42 = arith.cmpi eq, %arg1, %c0_i32_25 : i32
    %43 = arith.extui %42 : i1 to i32
    %c0_i32_26 = arith.constant 0 : i32
    %44 = arith.cmpi ne, %43, %c0_i32_26 : i32
    scf.if %44 {
      %c0_27 = arith.constant 0 : index
      %c0_28 = arith.constant 0 : index
      %45 = vector.load %arg9[%c0_27, %c0_28] : memref<32x128xf32, #tpu.memory_space<vmem>>, vector<32x128xf32>
      %46 = vector.shape_cast %45 : vector<32x128xf32> to vector<1x32x128xf32>
      %cst_29 = arith.constant dense<0.000000e+00> : vector<1xf32>
      %47 = vector.multi_reduction <add>, %46, %cst_29 [1, 2] : vector<1x32x128xf32> to vector<1xf32>
      %48 = vector.shape_cast %47 : vector<1xf32> to vector<1x1x1xf32>
      %49 = vector.extract %48[0, 0, 0] : f32 from vector<1x1x1xf32>
      %50 = vector.broadcast %49 : f32 to vector<1x1x1xf32>
      %c0_30 = arith.constant 0 : index
      %c0_31 = arith.constant 0 : index
      %c0_32 = arith.constant 0 : index
      %51 = vector.load %arg7[%c0_30, %c0_31, %c0_32] : memref<1x1x1xf32, #tpu.memory_space<vmem>>, vector<1x1x1xf32>
      tpu.vector_store %arg7[%c0_30, %c0_31, %c0_32], %50 {strides = array<i32>} : memref<1x1x1xf32, #tpu.memory_space<vmem>>, vector<1x1x1xf32>,
      %c0_33 = arith.constant 0 : index
      %c0_34 = arith.constant 0 : index
      %52 = vector.load %arg10[%c0_33, %c0_34] : memref<32x128xf32, #tpu.memory_space<vmem>>, vector<32x128xf32>
      %53 = vector.shape_cast %52 : vector<32x128xf32> to vector<1x32x128xf32>
      %cst_35 = arith.constant dense<0.000000e+00> : vector<1xf32>
      %54 = vector.multi_reduction <add>, %53, %cst_35 [1, 2] : vector<1x32x128xf32> to vector<1xf32>
      %55 = vector.shape_cast %54 : vector<1xf32> to vector<1x1x1xf32>
      %56 = vector.extract %55[0, 0, 0] : f32 from vector<1x1x1xf32>
      %57 = vector.broadcast %56 : f32 to vector<1x1x1xf32>
      %c0_36 = arith.constant 0 : index
      %c0_37 = arith.constant 0 : index
      %c0_38 = arith.constant 0 : index
      %58 = vector.load %arg8[%c0_36, %c0_37, %c0_38] : memref<1x1x1xf32, #tpu.memory_space<vmem>>, vector<1x1x1xf32>
      tpu.vector_store %arg8[%c0_36, %c0_37, %c0_38], %57 {strides = array<i32>} : memref<1x1x1xf32, #tpu.memory_space<vmem>>, vector<1x1x1xf32>,
    } else {
    }
    return
  }
  func.func @transform_0(%arg0: i32, %arg1: i32) -> (i32, i32) {
    %c1_i32 = arith.constant 1 : i32
    %0 = arith.muli %arg0, %c1_i32 : i32
    %1 = arith.addi %0, %arg1 : i32
    %c0_i32 = arith.constant 0 : i32
    %2 = arith.minsi %1, %c0_i32 : i32
    %c0_i32_0 = arith.constant 0 : i32
    %c0_i32_1 = arith.constant 0 : i32
    return %2, %c0_i32_0 : i32, i32
  }
  func.func @transform_1(%arg0: i32, %arg1: i32) -> (i32, i32) {
    %c1_i32 = arith.constant 1 : i32
    %0 = arith.muli %arg0, %c1_i32 : i32
    %1 = arith.addi %0, %arg1 : i32
    %c0_i32 = arith.constant 0 : i32
    %c0_i32_0 = arith.constant 0 : i32
    return %1, %c0_i32 : i32, i32
  }
  func.func @transform_2(%arg0: i32, %arg1: i32) -> (i32, i32) {
    %c0_i32 = arith.constant 0 : i32
    %c0_i32_0 = arith.constant 0 : i32
    %c0_i32_1 = arith.constant 0 : i32
    return %c0_i32, %c0_i32_0 : i32, i32
  }
  func.func @transform_3(%arg0: i32, %arg1: i32) -> (i32, i32) {
    %c0_i32 = arith.constant 0 : i32
    %c0_i32_0 = arith.constant 0 : i32
    %c0_i32_1 = arith.constant 0 : i32
    return %c0_i32, %c0_i32_0 : i32, i32
  }
  func.func @transform_4(%arg0: i32, %arg1: i32) -> (i32, i32) {
    %c0_i32 = arith.constant 0 : i32
    %c0_i32_0 = arith.constant 0 : i32
    %c0_i32_1 = arith.constant 0 : i32
    return %c0_i32, %c0_i32_0 : i32, i32
  }
  func.func @transform_5(%arg0: i32, %arg1: i32) -> (i32, i32, i32) {
    %c0_i32 = arith.constant 0 : i32
    %c0_i32_0 = arith.constant 0 : i32
    %c0_i32_1 = arith.constant 0 : i32
    return %arg0, %c0_i32, %c0_i32_0 : i32, i32, i32
  }
  func.func @transform_6(%arg0: i32, %arg1: i32) -> (i32, i32, i32) {
    %c0_i32 = arith.constant 0 : i32
    %c0_i32_0 = arith.constant 0 : i32
    %c0_i32_1 = arith.constant 0 : i32
    return %arg0, %c0_i32, %c0_i32_0 : i32, i32, i32
  }
}

</mosaic_0001>

<bundles_post_ra>
// kernel: tpu_custom_call.1
= control target key start
LH: loop header
LB: loop body
LE: loop exit
PB: predicated region body
PF: predicated region fallthrough
CT: control target
= control target key end

     0   :  { %12 = vsyncpa [#allocation5], 0  ;;  %s1323_s0 = inlined_call_operand.hbm [shape: f32[32,128], index: 0, kind: input, shape index: {}]   ;;  %s1324_s1 = inlined_call_operand.vmem [shape: s8[32,16], index: 1, kind: input, shape index: {}]   ;;  %s1325_s2 = inlined_call_operand.vmem [shape: f32[2,128], index: 2, kind: input, shape index: {}]   ;;  %s1326_s3 = inlined_call_operand.hbm [shape: f32[128,128], index: 3, kind: input, shape index: {}]   ;;  %s1327_s4 = inlined_call_operand.hbm [shape: f32[16,128], index: 4, kind: input, shape index: {}]   ;;  %s1328_s5 = inlined_call_operand.hbm [shape: f32[1,1,1], index: 5, kind: output, shape index: {0}]   ;;  %s1329_s6 = inlined_call_operand.hbm [shape: f32[1,1,1], index: 6, kind: output, shape index: {1}]  }
   0x1   :  { %13 = vsyncpa [#allocation8], 0 }
   0x2   :  { %14 = vsyncpa [#allocation6], 0 }
   0x3   :  { %15 = vsyncpa [#allocation12], 0  ;;  %s49_s23 = sshll.u32 %s1326_s3, 4  ;;  %s977_s24 = smov [#allocation7]   ;;  %s50_s23 = int_to_ptr.hbm [resolvable:$true] %s49_s23 }
   0x4   :  { %s51_s25 = sshll.u32 %s977_s24, 4  ;;  %s26_s28 = sshll.u32 %s1323_s0, 4  ;;  %s52_s25 = int_to_ptr.vmem [resolvable:$true] %s51_s25  ;;  %s27_s28 = int_to_ptr.hbm [resolvable:$true] %s26_s28 }
   0x5   :  { %s978_s29 = smov 128   ;;  %s979_s30 = smov 8  }
   0x6   :  { %57 = dma.hbm_to_vmem [thread:$0]  %s50_s23, 2048, %s52_s25, [#allocation8], %s978_s29, %s978_s29, %s979_s30  }
   0x7   :  { %s980_s7 = smov [#allocation4]   ;;  %s62_s11 = sshll.u32 %s1327_s4, 4  ;;  %s63_s11 = int_to_ptr.hbm [resolvable:$true] %s62_s11 }
   0x8   :  { %s28_s8 = sshll.u32 %s980_s7, 4  ;;  %s981_s3 = smov [#allocation9]   ;;  %s29_s8 = int_to_ptr.vmem [resolvable:$true] %s28_s8 }
   0x9   :  { %34 = dma.hbm_to_vmem [thread:$0]  %s27_s28, 512, %s29_s8, [#allocation5], %s978_s29, %s978_s29, %s979_s30  }
   0xa   :  { %s64_s12 = sshll.u32 %s981_s3, 4  ;;  %s65_s12 = int_to_ptr.vmem [resolvable:$true] %s64_s12 }
   0xb   :  { %70 = dma.hbm_to_vmem [thread:$0]  %s63_s11, 256, %s65_s12, [#allocation8], %s978_s29, %s978_s29, %s979_s30  }
   0xc   :  { %969 = dma.done.wait [#allocation5], 512  }
   0xd   :  { %970 = vsyncadd [#allocation5], 4294966784 }
   0xe   :  { %971 = dma.done.wait [#allocation8], 2304  }
   0xf   :  { %972 = vsyncadd [#allocation8], 4294964992  ;;  %v1028_v0 = vld [vmem:[#allocation4] sm:$0xff]  ;;  %v1030_v1 = vld [vmem:[#allocation4 + $0x10] sm:$0xff]  ;;  %vm126_vm0 = vcmask 130048   ;;  %s751_s17 = sshll.u32 %s1328_s5, 4  ;;  %s752_s17 = int_to_ptr.hbm [resolvable:$true] %s751_s17 }
  0x10   :  { %168 = vmax.xlane.f32.xlu0 %v1028_v0  ;;  %172 = vmax.xlane.f32.xlu1 %v1030_v1  ;;  %v125_v2 = vld [vmem:[#allocation9 + $0x8] sm:$0xff]  ;;  %v124_v3 = vld [vmem:[#allocation9] sm:$0xff]  ;;  %v203_v4 = vld [vmem:[#allocation7 + $0x78] sm:$0xff]  ;;  %vm724_vm5 = vcmask 0   ;;  %s983_s19 = smov [#allocation11]   ;;  %s762_s23 = sshll.u32 %s1329_s6, 4  ;;  %s763_s23 = int_to_ptr.hbm [resolvable:$true] %s762_s23 }
  0x11   :  { %153 = vmatpush.msra.mxu0 %v125_v2  ;;  %v1037_v5 = vld [vmem:[%s1324_s1] sm:$0xff]  ;;  %v202_v6 = vld [vmem:[#allocation7 + $0x70] sm:$0xff]  ;;  %v1039_v7 = vand.u32 4294901760, %v203_v4  ;;  %v201_v10 = vld [vmem:[#allocation7 + $0x68] sm:$0xff]  ;;  %s760_s20 = sshll.u32 %s983_s19, 4  ;;  %s761_s20 = int_to_ptr.vmem [resolvable:$true] %s760_s20 }
  0x12   :  { %v116_v8 = vunpack.c.0.s8 %v1037_v5  ;;  %v1042_v9 = vand.u32 4294901760, %v202_v6  ;;  %v200_v11 = vld [vmem:[#allocation7 + $0x60] sm:$0xff]  ;;  %v199_v12 = vld [vmem:[#allocation7 + $0x58] sm:$0xff]  ;;  %v1044_v13 = vand.u32 4294901760, %v201_v10  ;;  %v198_v16 = vld [vmem:[#allocation7 + $0x50] sm:$0xff]  ;;  %v117_v22 = vunpack.c.1.s8 %v1037_v5 }
  0x13   :  { %154 = vmatpush.msra.mxu0 %v124_v3  ;;  %v1046_v14 = vand.u32 4294901760, %v200_v11  ;;  %v1048_v15 = vand.u32 4294901760, %v199_v12  ;;  %v197_v17 = vld [vmem:[#allocation7 + $0x48] sm:$0xff]  ;;  %v196_v18 = vld [vmem:[#allocation7 + $0x40] sm:$0xff]  ;;  %v270_v19 = vsub.f32 %v203_v4, %v1039_v7  ;;  %205 = vmatpush.msra.mxu1 %v1039_v7  ;;  %v1057_v24 = vld [vmem:[#allocation4 + $0x18] sm:$0xff]  ;;  %v1062_v28 = vand.u32 4294901760, %v198_v16 }
  0x14   :  { %v120_v20 = vcvt.s32.f32 %v116_v8  ;;  %v276_v21 = vsub.f32 %v202_v6, %v1042_v9  ;;  %v1055_v23 = vld [vmem:[#allocation4 + $0x8] sm:$0xff]  ;;  %v282_v25 = vsub.f32 %v201_v10, %v1044_v13  ;;  %v195_v29 = vld [vmem:[#allocation7 + $0x38] sm:$0xff]  ;;  %v1069_v32 = vand.u32 4294901760, %v197_v17  ;;  %v194_v6 = vld [vmem:[#allocation7 + $0x30] sm:$0xff] }
  0x15   :  { %452 = vmatpush.msrb.mxu0 %v1039_v7  ;;  %v288_v26 = vsub.f32 %v200_v11, %v1046_v14  ;;  %v294_v27 = vsub.f32 %v199_v12, %v1048_v15  ;;  %v1064_v30 = vand.u32 4294901760, %v270_v19  ;;  %384 = vmatpush.msra.mxu3 %v270_v19  ;;  %v1071_v33 = vand.u32 4294901760, %v196_v18  ;;  %v193_v10 = vld [vmem:[#allocation7 + $0x28] sm:$0xff] }
  0x16   :  { %786 = vmatmul.msk.f32.vlgmr.msra.gmra.mxu0 %vm126_vm0, %v120_v20  ;;  %v1067_v31 = vand.u32 4294901760, %v276_v21  ;;  %v1073_v34 = vand.u32 4294901760, %v282_v25  ;;  %207 = vmatpush.msra.mxu1 %v1042_v9  ;;  %v300_v37 = vsub.f32 %v198_v16, %v1062_v28  ;;  %v306_v40 = vsub.f32 %v197_v17, %v1069_v32  ;;  %v192_v16 = vld [vmem:[#allocation7 + $0x20] sm:$0xff]  ;;  %v191_v20 = vld [vmem:[#allocation7 + $0x18] sm:$0xff] }
  0x17   :  { %v1075_v35 = vand.u32 4294901760, %v288_v26  ;;  %454 = vmatpush.msrb.mxu0 %v1042_v9  ;;  %v1078_v36 = vand.u32 4294901760, %v294_v27  ;;  %v272_v38 = vsub.f32 %v270_v19, %v1064_v30  ;;  %v1087_v41 = vand.u32 4294901760, %v195_v29  ;;  %387 = vmatpush.msra.mxu3 %v276_v21 }
  0x18   :  { %170 = vmax.xlane.f32.xlu0 %v1055_v23  ;;  %174 = vmax.xlane.f32.xlu1 %v1057_v24  ;;  %v278_v39 = vsub.f32 %v276_v21, %v1067_v31  ;;  %v284_v42 = vsub.f32 %v282_v25, %v1073_v34  ;;  %v121_v44 = vcvt.s32.f32 %v117_v22  ;;  %v1092_v47 = vand.u32 4294901760, %v300_v37 }
  0x19   :  { %v290_v43 = vsub.f32 %v288_v26, %v1075_v35  ;;  %456 = vmatpush.msrb.mxu0 %v1044_v13  ;;  %v273_v45 = vand.u32 4294901760, %v272_v38  ;;  %209 = vmatpush.msra.mxu1 %v1044_v13  ;;  %v312_v48 = vsub.f32 %v196_v18, %v1071_v33  ;;  %v296_v50 = vsub.f32 %v294_v27, %v1078_v36 }
  0x1a   :  { %v279_v46 = vand.u32 4294901760, %v278_v39  ;;  %390 = vmatpush.msra.mxu3 %v282_v25  ;;  %v285_v49 = vand.u32 4294901760, %v284_v42  ;;  %v1098_v51 = vand.u32 4294901760, %v306_v40  ;;  %v318_v52 = vsub.f32 %v195_v29, %v1087_v41  ;;  %v189_v42 = vld [vmem:[#allocation7 + $0x8] sm:$0xff] }
  0x1b   :  { %458 = vmatpush.msrb.mxu0 %v1046_v14  ;;  %274 = vmatpush.msra.mxu2 %v273_v45  ;;  %v291_v53 = vand.u32 4294901760, %v290_v43  ;;  %v302_v54 = vsub.f32 %v300_v37, %v1092_v47  ;;  %v1105_v55 = vand.u32 4294901760, %v312_v48  ;;  %v118_v56 = vunpack.c.2.s8 %v1037_v5 }
  0x1c   :  { %211 = vmatpush.msra.mxu1 %v1046_v14  ;;  %393 = vmatpush.msra.mxu3 %v288_v26  ;;  %v297_v57 = vand.u32 4294901760, %v296_v50  ;;  %v308_v58 = vsub.f32 %v306_v40, %v1098_v51  ;;  %v1111_v59 = vand.u32 4294901760, %v318_v52  ;;  %v1123_v8 = vand.u32 4294901760, %v194_v6 }
  0x1d   :  { %460 = vmatpush.msrb.mxu0 %v1048_v15  ;;  %280 = vmatpush.msra.mxu2 %v279_v46  ;;  %v303_v60 = vand.u32 4294901760, %v302_v54  ;;  %v314_v61 = vsub.f32 %v312_v48, %v1105_v55  ;;  %v122_v62 = vcvt.s32.f32 %v118_v56  ;;  %v1126_v12 = vand.u32 4294901760, %v193_v10 }
  0x1e   :  { %787 = vmatmul.msk.f32.gmra.mxu0 %vm126_vm0, %v121_v44  ;;  %396 = vmatpush.msra.mxu3 %v294_v27  ;;  %v309_v63 = vand.u32 4294901760, %v308_v58  ;;  %v320_v2 = vsub.f32 %v318_v52, %v1111_v59  ;;  %v324_v11 = vsub.f32 %v194_v6, %v1123_v8  ;;  %v1133_v19 = vand.u32 4294901760, %v192_v16  ;;  %v190_v27 = vld [vmem:[#allocation7 + $0x10] sm:$0xff] }
  0x1f   :  { %462 = vmatpush.msrb.mxu0 %v1062_v28  ;;  %286 = vmatpush.msra.mxu2 %v285_v49  ;;  %v315_v3 = vand.u32 4294901760, %v314_v61  ;;  %v330_v18 = vsub.f32 %v193_v10, %v1126_v12  ;;  %v1141_v26 = vand.u32 4294901760, %v191_v20  ;;  %v1156_v46 = vand.u32 4294901760, %v189_v42  ;;  %v188_v49 = vld [vmem:[#allocation7] sm:$0xff] }
  0x20   :  { %213 = vmatpush.msra.mxu1 %v1048_v15  ;;  %399 = vmatpush.msra.mxu3 %v300_v37  ;;  %v321_v4 = vand.u32 4294901760, %v320_v2  ;;  %v1130_v17 = vand.u32 4294901760, %v324_v11  ;;  %v336_v25 = vsub.f32 %v192_v16, %v1133_v19  ;;  %v1163_v54 = vand.u32 4294901760, %v188_v49 }
  0x21   :  { %464 = vmatpush.msrb.mxu0 %v1069_v32  ;;  %292 = vmatpush.msra.mxu2 %v291_v53  ;;  %v1138_v22 = vand.u32 4294901760, %v330_v18  ;;  %v342_v39 = vsub.f32 %v191_v20, %v1141_v26  ;;  %v354_v53 = vsub.f32 %v189_v42, %v1156_v46  ;;  %v119_v56 = vunpack.c.3.s8 %v1037_v5 }
  0x22   :  { %215 = vmatpush.msra.mxu1 %v1062_v28  ;;  %402 = vmatpush.msra.mxu3 %v306_v40  ;;  %v326_v21 = vsub.f32 %v324_v11, %v1130_v17  ;;  %v1146_v38 = vand.u32 4294901760, %v336_v25  ;;  %v1150_v40 = vand.u32 4294901760, %v190_v27  ;;  %v360_v61 = vsub.f32 %v188_v49, %v1163_v54 }
  0x23   :  { %466 = vmatpush.msrb.mxu0 %v1071_v33  ;;  %298 = vmatpush.msra.mxu2 %v297_v57  ;;  %v332_v37 = vsub.f32 %v330_v18, %v1138_v22  ;;  %v1154_v45 = vand.u32 4294901760, %v342_v39 }
  0x24   :  { %217 = vmatpush.msra.mxu1 %v1069_v32  ;;  %405 = vmatpush.msra.mxu3 %v312_v48  ;;  %v327_v29 = vand.u32 4294901760, %v326_v21  ;;  %v338_v44 = vsub.f32 %v336_v25, %v1146_v38  ;;  %v348_v48 = vsub.f32 %v190_v27, %v1150_v40  ;;  %v1176_v2 = vand.u32 4294901760, %v360_v61 }
  0x25   :  { %468 = vmatpush.msrb.mxu0 %v1087_v41  ;;  %304 = vmatpush.msra.mxu2 %v303_v60  ;;  %v333_v43 = vand.u32 4294901760, %v332_v37  ;;  %v1169_v60 = vand.u32 4294901760, %v354_v53 }
  0x26   :  { %788 = vmatmul.msk.f32.gmra.mxu0 %vm126_vm0, %v122_v62  ;;  %408 = vmatpush.msra.mxu3 %v318_v52  ;;  %v339_v50 = vand.u32 4294901760, %v338_v44  ;;  %v344_v52 = vsub.f32 %v342_v39, %v1154_v45  ;;  %v1166_v57 = vand.u32 4294901760, %v348_v48  ;;  %v123_v62 = vcvt.s32.f32 %v119_v56 }
  0x27   :  { %219 = vmatpush.msra.mxu1 %v1071_v33  ;;  %310 = vmatpush.msra.mxu2 %v309_v63  ;;  %v356_v5 = vsub.f32 %v354_v53, %v1169_v60  ;;  %v362_v6 = vsub.f32 %v360_v61, %v1176_v2 }
  0x28   :  { %470 = vmatpush.msrb.mxu0 %v1123_v8  ;;  %411 = vmatpush.msra.mxu3 %v324_v11  ;;  %v345_v58 = vand.u32 4294901760, %v344_v52  ;;  %v350_v63 = vsub.f32 %v348_v48, %v1166_v57 }
  0x29   :  { %221 = vmatpush.msra.mxu1 %v1087_v41  ;;  %316 = vmatpush.msra.mxu2 %v315_v3  ;;  %v363_v10 = vand.u32 4294901760, %v362_v6 }
  0x2a   :  { %472 = vmatpush.msrb.mxu0 %v1126_v12  ;;  %414 = vmatpush.msra.mxu3 %v330_v18  ;;  %v351_v3 = vand.u32 4294901760, %v350_v63 }
  0x2b   :  { %322 = vmatpush.msra.mxu2 %v321_v4  ;;  %223 = vmatpush.msra.mxu1 %v1123_v8  ;;  %v357_v4 = vand.u32 4294901760, %v356_v5 }
  0x2c   :  { %474 = vmatpush.msrb.mxu0 %v1133_v19  ;;  %417 = vmatpush.msra.mxu3 %v336_v25  ;;  %v114_v25 = vld [vmem:[%s1325_s2] sm:$0x3]  ;;  %s982_s2 = smov [#allocation10]  }
  0x2d   :  { %225 = vmatpush.msra.mxu1 %v1126_v12  ;;  %328 = vmatpush.msra.mxu2 %v327_v29  ;;  %v1266_v27 = vperm.slane %v114_v25, 0  ;;  %s749_s14 = sshll.u32 %s982_s2, 4  ;;  %s750_s14 = int_to_ptr.vmem [resolvable:$true] %s749_s14 }
  0x2e   :  { %476 = vmatpush.msrb.mxu0 %v1141_v26  ;;  %420 = vmatpush.msra.mxu3 %v342_v39 }
  0x2f   :  { %227 = vmatpush.msra.mxu1 %v1133_v19  ;;  %334 = vmatpush.msra.mxu2 %v333_v43 }
  0x30   :  { %478 = vmatpush.msrb.mxu0 %v1150_v40  ;;  %423 = vmatpush.msra.mxu3 %v348_v48 }
  0x31   :  { %229 = vmatpush.msra.mxu1 %v1141_v26  ;;  %340 = vmatpush.msra.mxu2 %v339_v50 }
  0x32   :  { %480 = vmatpush.msrb.mxu0 %v1156_v46  ;;  %426 = vmatpush.msra.mxu3 %v354_v53 }
  0x33   :  { %231 = vmatpush.msra.mxu1 %v1150_v40  ;;  %346 = vmatpush.msra.mxu2 %v345_v58 }
  0x34   :  { %482 = vmatpush.msrb.mxu0 %v1163_v54  ;;  %429 = vmatpush.msra.mxu3 %v360_v61 }
  0x35   :  { %233 = vmatpush.msra.mxu1 %v1156_v46  ;;  %789 = vmatmul.msk.f32.gmra.mxu0 %vm126_vm0, %v123_v62 }
  0x36   :  { %590 = vmatpush.msra.mxu0 %v1039_v7  ;;  %790 = vmatpush.msrb.mxu3 %v1064_v30 }
  0x37   :  { %235 = vmatpush.msra.mxu1 %v1163_v54  ;;  %352 = vmatpush.msra.mxu2 %v351_v3 }
  0x38   :  { %592 = vmatpush.msra.mxu0 %v1042_v9  ;;  %791 = vmatpush.msrb.mxu3 %v1067_v31 }
  0x39   :  { %511 = vmatpush.msrb.mxu1 %v1064_v30  ;;  %358 = vmatpush.msra.mxu2 %v357_v4 }
  0x3a   :  { %594 = vmatpush.msra.mxu0 %v1044_v13  ;;  %792 = vmatpush.msrb.mxu3 %v1073_v34 }
  0x3b   :  { %515 = vmatpush.msrb.mxu1 %v1067_v31  ;;  %364 = vmatpush.msra.mxu2 %v363_v10 }
  0x3c   :  { %596 = vmatpush.msra.mxu0 %v1046_v14  ;;  %793 = vmatpush.msrb.mxu3 %v1075_v35 }
  0x3d   :  { %806 = vmatpush.msrb.mxu2 %v1039_v7  ;;  %519 = vmatpush.msrb.mxu1 %v1073_v34 }
  0x3e   :  { %598 = vmatpush.msra.mxu0 %v1048_v15  ;;  %794 = vmatpush.msrb.mxu3 %v1078_v36 }
  0x3f   :  { %807 = vmatpush.msrb.mxu2 %v1042_v9  ;;  %523 = vmatpush.msrb.mxu1 %v1075_v35 }
  0x40   :  { %600 = vmatpush.msra.mxu0 %v1062_v28  ;;  %795 = vmatpush.msrb.mxu3 %v1092_v47 }
  0x41   :  { %808 = vmatpush.msrb.mxu2 %v1044_v13  ;;  %527 = vmatpush.msrb.mxu1 %v1078_v36 }
  0x42   :  { %602 = vmatpush.msra.mxu0 %v1069_v32  ;;  %796 = vmatpush.msrb.mxu3 %v1098_v51 }
  0x43   :  { %809 = vmatpush.msrb.mxu2 %v1046_v14  ;;  %531 = vmatpush.msrb.mxu1 %v1092_v47 }
  0x44   :  { %604 = vmatpush.msra.mxu0 %v1071_v33  ;;  %797 = vmatpush.msrb.mxu3 %v1105_v55 }
  0x45   :  { %810 = vmatpush.msrb.mxu2 %v1048_v15  ;;  %535 = vmatpush.msrb.mxu1 %v1098_v51 }
  0x46   :  { %606 = vmatpush.msra.mxu0 %v1087_v41  ;;  %798 = vmatpush.msrb.mxu3 %v1111_v59 }
  0x47   :  { %811 = vmatpush.msrb.mxu2 %v1062_v28  ;;  %539 = vmatpush.msrb.mxu1 %v1105_v55 }
  0x48   :  { %608 = vmatpush.msra.mxu0 %v1123_v8  ;;  %799 = vmatpush.msrb.mxu3 %v1130_v17 }
  0x49   :  { %812 = vmatpush.msrb.mxu2 %v1069_v32  ;;  %543 = vmatpush.msrb.mxu1 %v1111_v59 }
  0x4a   :  { %610 = vmatpush.msra.mxu0 %v1126_v12  ;;  %800 = vmatpush.msrb.mxu3 %v1138_v22 }
  0x4b   :  { %813 = vmatpush.msrb.mxu2 %v1071_v33  ;;  %547 = vmatpush.msrb.mxu1 %v1130_v17 }
  0x4c   :  { %612 = vmatpush.msra.mxu0 %v1133_v19  ;;  %801 = vmatpush.msrb.mxu3 %v1146_v38 }
  0x4d   :  { %814 = vmatpush.msrb.mxu2 %v1087_v41  ;;  %551 = vmatpush.msrb.mxu1 %v1138_v22 }
  0x4e   :  { %614 = vmatpush.msra.mxu0 %v1141_v26  ;;  %802 = vmatpush.msrb.mxu3 %v1154_v45 }
  0x4f   :  { %815 = vmatpush.msrb.mxu2 %v1123_v8  ;;  %555 = vmatpush.msrb.mxu1 %v1146_v38  ;;  %v1268_v38 = vperm.slane %v114_v25, 1 }
  0x50   :  { %616 = vmatpush.msra.mxu0 %v1150_v40  ;;  %803 = vmatpush.msrb.mxu3 %v1166_v57 }
  0x51   :  { %816 = vmatpush.msrb.mxu2 %v1126_v12  ;;  %559 = vmatpush.msrb.mxu1 %v1154_v45 }
  0x52   :  { %618 = vmatpush.msra.mxu0 %v1156_v46  ;;  %804 = vmatpush.msrb.mxu3 %v1169_v60 }
  0x53   :  { %817 = vmatpush.msrb.mxu2 %v1133_v19  ;;  %563 = vmatpush.msrb.mxu1 %v1166_v57 }
  0x54   :  { %620 = vmatpush.msra.mxu0 %v1163_v54  ;;  %805 = vmatpush.msrb.mxu3 %v1176_v2 }
  0x55   :  { %818 = vmatpush.msrb.mxu2 %v1141_v26  ;;  %567 = vmatpush.msrb.mxu1 %v1169_v60 }
  0x57   :  { %819 = vmatpush.msrb.mxu2 %v1150_v40  ;;  %571 = vmatpush.msrb.mxu1 %v1176_v2 }
  0x59   :  { %820 = vmatpush.msrb.mxu2 %v1156_v46 }
  0x5b   :  { %821 = vmatpush.msrb.mxu2 %v1163_v54 }
  0x83   :  { %v169_v7 = vpop.xlane.xlu0 %168  ;;  %v173_v9 = vpop.xlane.xlu1 %172 }
  0x84   :  { %v1227_v13 = vsub.f32 %v1028_v0, %v169_v7  ;;  %v1235_v15 = vsub.f32 %v1030_v1, %v173_v9 }
  0x86   :  { %v180_v14 = vmul.f32 1.442695, %v1227_v13  ;;  %v184_v0 = vmul.f32 1.442695, %v1235_v15 }
  0x88   :  { %833 = vpow2.f32 %v180_v14 }
  0x89   :  { %835 = vpow2.f32 %v184_v0 }
  0x8b   :  { %v171_v1 = vpop.xlane.xlu0 %170  ;;  %v175_v28 = vpop.xlane.xlu1 %174 }
  0x8c   :  { %v1250_v30 = vsub.f32 %v1055_v23, %v171_v1  ;;  %v1256_v33 = vsub.f32 %v1057_v24, %v175_v28 }
  0x8e   :  { %v834_v31 = vpop.eup %833  ;;  %v182_v32 = vmul.f32 1.442695, %v1250_v30  ;;  %v186_v35 = vmul.f32 1.442695, %v1256_v33 }
  0x8f   :  { %v236_v34 = vand.u32 4294901760, %v834_v31  ;;  %v836_v41 = vpop.eup %835 }
  0x90   :  { %837 = vpow2.f32 %v182_v32  ;;  %v252_v59 = vand.u32 4294901760, %v836_v41 }
  0x91   :  { %366 = vmatmul.f32.vlgmr.msra.gmra.mxu2 %v236_v34  ;;  %v237_v23 = vsub.f32 %v834_v31, %v236_v34  ;;  %839 = vpow2.f32 %v186_v35 }
  0x92   :  { %v253_v12 = vsub.f32 %v836_v41, %v252_v59 }
  0x93   :  { %432 = vmatmul.f32.vlgmr.msra.gmra.mxu3 %v237_v23  ;;  %v238_v36 = vand.u32 4294901760, %v237_v23  ;;  %v1264_v26 = vpop.f32.mrf.mxu0 }
  0x94   :  { %v254_v19 = vand.u32 4294901760, %v253_v12  ;;  %vm651_vm1 = vcmp.eq.f32.partialorder %v1266_v27, %v1264_v26 }
  0x95   :  { %486 = vmatmul.f32.vlgmr.msrb.gmra.mxu0 %v238_v36  ;;  %v239_v47 = vsub.f32 %v237_v23, %v238_v36  ;;  %v656_v40 = vsel %vm651_vm1, %v1268_v38, 0.0 }
  0x96   :  { %v838_v51 = vpop.eup %837  ;;  %v255_v21 = vsub.f32 %v253_v12, %v254_v19 }
  0x97   :  { %v240_v55 = vand.u32 4294901760, %v239_v47  ;;  %v244_v24 = vand.u32 4294901760, %v838_v51  ;;  %v840_v16 = vpop.eup %839 }
  0x98   :  { %v260_v20 = vand.u32 4294901760, %v840_v16  ;;  %v256_v29 = vand.u32 4294901760, %v255_v21 }
  0x99   :  { %241 = vmatmul.f32.vlgmr.msra.gmra.mxu1 %v240_v55  ;;  %370 = vmatmul.f32.gmra.mxu2 %v244_v24  ;;  %v245_v8 = vsub.f32 %v838_v51, %v244_v24 }
  0x9a   :  { %v261_v22 = vsub.f32 %v840_v16, %v260_v20 }
  0x9b   :  { %437 = vmatmul.f32.gmra.mxu3 %v245_v8  ;;  %v246_v11 = vand.u32 4294901760, %v245_v8  ;;  %v1276_v42 = vpop.f32.mrf.mxu0 }
  0x9c   :  { %v262_v37 = vand.u32 4294901760, %v261_v22  ;;  %vm652_vm2 = vcmp.eq.f32.partialorder %v1266_v27, %v1276_v42 }
  0x9d   :  { %492 = vmatmul.f32.gmra.mxu0 %v246_v11  ;;  %v247_v17 = vsub.f32 %v245_v8, %v246_v11  ;;  %v657_v43 = vsel %vm652_vm2, %v1268_v38, 0.0 }
  0x9e   :  { %v263_v39 = vsub.f32 %v261_v22, %v262_v37  ;;  %v730_v44 = vadd.f32 %v657_v43, %v656_v40 }
  0x9f   :  { %v248_v18 = vand.u32 4294901760, %v247_v17 }
  0xa0   :  { %v264_v45 = vand.u32 4294901760, %v263_v39 }
  0xa1   :  { %249 = vmatmul.f32.gmra.mxu1 %v248_v18  ;;  %374 = vmatmul.f32.gmra.mxu2 %v252_v59 }
  0xa3   :  { %442 = vmatmul.f32.gmra.mxu3 %v253_v12  ;;  %v1284_v46 = vpop.f32.mrf.mxu0 }
  0xa4   :  { %vm653_vm3 = vcmp.eq.f32.partialorder %v1266_v27, %v1284_v46 }
  0xa5   :  { %498 = vmatmul.f32.gmra.mxu0 %v254_v19  ;;  %v658_v48 = vsel %vm653_vm3, %v1268_v38, 0.0 }
  0xa6   :  { %v1292_v49 = vadd.f32 %v730_v44, %v658_v48 }
  0xa9   :  { %257 = vmatmul.f32.gmra.mxu1 %v256_v29  ;;  %378 = vmatmul.f32.gmra.mxu2 %v260_v20 }
  0xab   :  { %447 = vmatmul.f32.gmra.mxu3 %v261_v22 }
  0xad   :  { %504 = vmatmul.f32.gmra.mxu0 %v262_v37 }
  0xb1   :  { %265 = vmatmul.f32.gmra.mxu1 %v264_v45  ;;  %626 = vmatmul.f32.vlgmr.msrb.gmra.mxu2 %v244_v24 }
  0xb2   :  { %v1294_v50 = vpop.f32.mrf.mxu0 }
  0xb3   :  { %577 = vmatmul.f32.vlgmr.msrb.gmra.mxu3 %v244_v24  ;;  %vm654_vm4 = vcmp.eq.f32.partialorder %v1266_v27, %v1294_v50 }
  0xb5   :  { %622 = vmatmul.f32.vlgmr.msra.gmra.mxu0 %v236_v34 }
  0xb9   :  { %573 = vmatmul.f32.vlgmr.msrb.gmra.mxu1 %v236_v34  ;;  %630 = vmatmul.f32.gmra.mxu2 %v252_v59 }
  0xbb   :  { %581 = vmatmul.f32.gmra.mxu3 %v252_v59 }
  0xc1   :  { %634 = vmatmul.f32.gmra.mxu2 %v260_v20 }
  0xc3   :  { %585 = vmatmul.f32.gmra.mxu3 %v260_v20 }
 0x112   :  { %v487_v52 = vpop.f32.mrf.mxu0 }
 0x114   :  { %v367_v53 = vpop.f32.mrf.mxu2 }
 0x116   :  { %v242_v54 = vpop.f32.mrf.mxu1  ;;  %v433_v56 = vpop.f32.mrf.mxu3 }
 0x117   :  { %v368_v4 = vadd.f32 %v367_v53, %v242_v54 }
 0x119   :  { %v434_v14 = vadd.f32 %v433_v56, %v368_v4 }
 0x11a   :  { %v493_v57 = vpop.f32.mrf.mxu0 }
 0x11b   :  { %v488_v31 = vadd.f32 %v487_v52, %v434_v14 }
 0x11c   :  { %v371_v58 = vpop.f32.mrf.mxu2 }
 0x11e   :  { %v250_v60 = vpop.f32.mrf.mxu1  ;;  %v438_v61 = vpop.f32.mrf.mxu3 }
 0x11f   :  { %v372_v6 = vadd.f32 %v371_v58, %v250_v60 }
 0x121   :  { %v439_v0 = vadd.f32 %v438_v61, %v372_v6 }
 0x122   :  { %v499_v62 = vpop.f32.mrf.mxu0 }
 0x123   :  { %v494_v32 = vadd.f32 %v493_v57, %v439_v0 }
 0x124   :  { %v375_v63 = vpop.f32.mrf.mxu2 }
 0x126   :  { %v258_v5 = vpop.f32.mrf.mxu1  ;;  %v443_v2 = vpop.f32.mrf.mxu3 }
 0x127   :  { %v376_v28 = vadd.f32 %v375_v63, %v258_v5 }
 0x129   :  { %v444_v47 = vadd.f32 %v443_v2, %v376_v28 }
 0x12a   :  { %v505_v10 = vpop.f32.mrf.mxu0 }
 0x12b   :  { %v500_v11 = vadd.f32 %v499_v62, %v444_v47 }
 0x12c   :  { %v379_v3 = vpop.f32.mrf.mxu2 }
 0x12e   :  { %v266_v7 = vpop.f32.mrf.mxu1  ;;  %v448_v9 = vpop.f32.mrf.mxu3 }
 0x12f   :  { %v380_v8 = vadd.f32 %v379_v3, %v266_v7 }
 0x131   :  { %v449_v18 = vadd.f32 %v448_v9, %v380_v8 }
 0x132   :  { %v623_v41 = vpop.f32.mrf.mxu0 }
 0x133   :  { %v506_v37 = vadd.f32 %v505_v10, %v449_v18 }
 0x134   :  { %v627_v1 = vpop.f32.mrf.mxu2 }
 0x136   :  { %v574_v34 = vpop.f32.mrf.mxu1  ;;  %v578_v23 = vpop.f32.mrf.mxu3 }
 0x137   :  { %v575_v35 = vadd.f32 %v574_v34, %v488_v31  ;;  %v579_v36 = vadd.f32 %v578_v23, %v494_v32 }
 0x139   :  { %v624_v51 = vadd.f32 %v623_v41, %v575_v35  ;;  %v628_v55 = vadd.f32 %v627_v1, %v579_v36 }
 0x13b   :  { %v638_v24 = vmax.f32 %v624_v51, 1.1754944e-38  ;;  %v639_v59 = vmax.f32 %v628_v55, 1.1754944e-38 }
 0x13c   :  { %v631_v12 = vpop.f32.mrf.mxu2 }
 0x13d   :  { %841 = vlog2.f32 %v638_v24 }
 0x13e   :  { %843 = vlog2.f32 %v639_v59  ;;  %v582_v16 = vpop.f32.mrf.mxu3 }
 0x13f   :  { %v583_v17 = vadd.f32 %v582_v16, %v500_v11 }
 0x141   :  { %v632_v19 = vadd.f32 %v631_v12, %v583_v17 }
 0x143   :  { %v842_v20 = vpop.eup %841  ;;  %v640_v21 = vmax.f32 %v632_v19, 1.1754944e-38 }
 0x144   :  { %v844_v22 = vpop.eup %843  ;;  %v643_v25 = vmul.f32 0.6931472, %v842_v20  ;;  %v635_v45 = vpop.f32.mrf.mxu2 }
 0x145   :  { %v645_v29 = vmul.f32 0.6931472, %v844_v22  ;;  %845 = vlog2.f32 %v640_v21 }
 0x146   :  { %v660_v39 = vsub.f32 %v643_v25, %v1227_v13  ;;  %v586_v40 = vpop.f32.mrf.mxu3 }
 0x147   :  { %v661_v43 = vsub.f32 %v645_v29, %v1250_v30  ;;  %v587_v44 = vadd.f32 %v586_v40, %v506_v37 }
 0x148   :  { %v664_v48 = vmul.f32 %v660_v39, %v1268_v38 }
 0x149   :  { %v636_v52 = vadd.f32 %v635_v45, %v587_v44  ;;  %v665_v53 = vmul.f32 %v661_v43, %v1268_v38 }
 0x14a   :  { %v668_v54 = vsel %vm651_vm1, %v664_v48, 0.0 }
 0x14b   :  { %v846_v56 = vpop.eup %845  ;;  %v641_v57 = vmax.f32 %v636_v52, 1.1754944e-38  ;;  %v669_v13 = vsel %vm652_vm2, %v665_v53, 0.0 }
 0x14c   :  { %v647_v58 = vmul.f32 0.6931472, %v846_v56  ;;  %v711_v60 = vadd.f32 %v669_v13, %v668_v54 }
 0x14d   :  { %847 = vlog2.f32 %v641_v57 }
 0x14e   :  { %v662_v30 = vsub.f32 %v647_v58, %v1235_v15  ;;  %v659_v15 = vsel %vm654_vm4, %v1268_v38, 0.0 }
 0x14f   :  { %v732_v6 = vadd.f32 %v1292_v49, %v659_v15 }
 0x150   :  { %v666_v61 = vmul.f32 %v662_v30, %v1268_v38 }
 0x152   :  { %v670_v62 = vsel %vm653_vm3, %v666_v61, 0.0 }
 0x153   :  { %v848_v63 = vpop.eup %847  ;;  %v712_v26 = vadd.f32 %v711_v60, %v670_v62 }
 0x154   :  { %v649_v5 = vmul.f32 0.6931472, %v848_v63 }
 0x156   :  { %v663_v2 = vsub.f32 %v649_v5, %v1256_v33 }
 0x158   :  { %v667_v3 = vmul.f32 %v663_v2, %v1268_v38 }
 0x15a   :  { %v671_v42 = vsel %vm654_vm4, %v667_v3, 0.0 }
 0x15b   :  { %v713_v4 = vadd.f32 %v712_v26, %v671_v42 }
 0x15d   :  { %714 = vadd.xlane.f32.xlu2 %v713_v4 }
 0x165   :  { %733 = vadd.xlane.f32.xlu2 %v732_v6 }
 0x1d0   :  { %v715_v46 = vpop.xlane.xlu2 %714 }
 0x1d1   :  { %v716_v10 = vrot.slane %v715_v46, 4 }
 0x1d3   :  { %v717_v7 = vadd.f32 %v716_v10, %v715_v46 }
 0x1d5   :  { %v718_v9 = vrot.slane %v717_v7, 2 }
 0x1d7   :  { %v719_v14 = vadd.f32 %v718_v9, %v717_v7 }
 0x1d8   :  { %v734_v0 = vpop.xlane.xlu2 %733 }
 0x1d9   :  { %v735_v33 = vrot.slane %v734_v0, 4  ;;  %v720_v1 = vrot.slane %v719_v14, 1 }
 0x1db   :  { %v736_v28 = vadd.f32 %v735_v33, %v734_v0  ;;  %v721_v31 = vadd.f32 %v720_v1, %v719_v14 }
 0x1dd   :  { %v737_v32 = vrot.slane %v736_v28, 2  ;;  %822 = vpush %v721_v31 }
 0x1df   :  { %v738_v27 = vadd.f32 %v737_v32, %v736_v28 }
 0x1e1   :  { %v739_v50 = vrot.slane %v738_v27, 1 }
 0x1e3   :  { %v740_v34 = vadd.f32 %v739_v50, %v738_v27 }
 0x1e5   :  { %824 = vpush %v740_v34 }
 0x20e   :  { %s823_s18 = spop %822 }
 0x20f   :  { %v723_v38 = vstv %s823_s18 }
 0x210   :  { %725 = vst.msk [vmem:[#allocation10] sm:$0x1] %vm724_vm5, %v723_v38 }
 0x211   :  { %754 = dma.vmem_to_hbm [thread:$0]  %s750_s14, 16, %s752_s17, [#allocation6]  }
 0x216   :  { %s825_s24 = spop %824 }
 0x217   :  { %v742_v49 = vstv %s825_s24 }
 0x218   :  { %743 = vst.msk [vmem:[#allocation11] sm:$0x1] %vm724_vm5, %v742_v49 }
 0x219   :  { %765 = dma.vmem_to_hbm [thread:$0]  %s761_s20, 16, %s763_s23, [#allocation12]  }
 0x21a   :  { %973 = dma.done.wait [#allocation6], 16  }
 0x21b   :  { %974 = vsyncadd [#allocation6], 4294967280 }
 0x21c   :  { %975 = dma.done.wait [#allocation12], 16  }
 0x21d   :  { %976 = vsyncadd [#allocation12], 4294967280 }
 0x21e   :  { %774 = vsyncpa [#allocation5], 1 }
 0x21f   :  { %775 = vsyncpa [#allocation8], 1 }
 0x220   :  { %776 = vsyncpa [#allocation6], 1 }
 0x221   :  { %777 = vsyncpa [#allocation12], 1 }

</bundles_post_ra>
